<compile_context>
chip_gen: v7x
topology: tpu7x:2x2x1
jax: 0.10.0
libtpu: 0.0.40
codegen_flags: <defaults>
</compile_context>

<pallas_src>
import jax
import jax.numpy as jnp
from jax.experimental import pallas as pl
from jax.experimental.pallas import tpu as pltpu

ATT_ALPHA = 0.2    # LeakyReLU slope inside the attention layer (pyGAT default)
OUT_ALPHA = 0.01   # nn.LeakyReLU() default slope applied after self.linear
OUT_LANES = 128    # lane-dense padded width of the kernel output


def gat1_kernel(xflat_ref, wpack_ref, wdstT_ref, wlin_ref, tail_ref, b_out_ref,
                o_ref, act_ref):
    """Fused GAT1 forward, fully VMEM-resident, single invocation.

    xflat_ref : (B*N, F)        node features, batch/node dims pre-flattened
    wpack_ref : (F, H*D + H)    [ head-0 W | ... | head-(H-1) W | per-head a_src proj cols ]
    wdstT_ref : (H, F)          per-head a_dst projection rows (W_att[h] @ a_dst_h)
    wlin_ref  : (N*H*D, O)      self.linear weight, rows in torch flatten order n*H*D+h*D+d
    tail_ref  : (2, O)          row 0 = self.linear bias, row 1 = self.layer_out weight (row)
    b_out_ref : (1, 1)  SMEM    self.layer_out bias (scalar)
    o_ref     : (B, OUT_LANES)  output, broadcast across lanes (sliced to (B,1) outside)
    act_ref   : (B, N*H*D)      VMEM scratch holding the concatenated/flattened head outputs
    """
    BN, _ = xflat_ref.shape
    H = wdstT_ref.shape[0]
    HD = wpack_ref.shape[1] - H          # H * D
    D = HD // H
    B = act_ref.shape[0]
    N = BN // B

    xflat = xflat_ref[...].astype(jnp.float32)                         # (B*N, F)

    # One MXU matmul gives every head's Wh block and every f_src column.
    whall = jnp.dot(xflat, wpack_ref[...],
                    preferred_element_type=jnp.float32)                # (B*N, H*D + H)
    # One rhs-transposed matmul gives every (b, h) f_dst row.
    fdst_all = jax.lax.dot_general(
        wdstT_ref[...], xflat, (((1,), (1,)), ((), ())),
        preferred_element_type=jnp.float32)                            # (H, B*N)

    b_lin = tail_ref[0:1, :]          # (1, O)
    w_out = tail_ref[1:2, :]          # (1, O)
    b_out = b_out_ref[0, 0]           # scalar from SMEM

    for b in range(B):                # B, H, N tiny & static -> fully unrolled
        for h in range(H):
            wh = whall[b * N:(b + 1) * N, h * D:(h + 1) * D]           # (N, D)
            f_src = whall[b * N:(b + 1) * N, HD + h:HD + h + 1]        # (N, 1)
            f_dst = fdst_all[h:h + 1, b * N:(b + 1) * N]               # (1, N)
            # attention logits e[i, j] = LeakyReLU(a_src.Wh_i + a_dst.Wh_j)
            e = f_src + f_dst                                          # (N, N)
            e = jnp.where(e >= 0.0, e, ATT_ALPHA * e)                  # LeakyReLU(0.2)
            # softmax over neighbours (dense adjacency); divide -> EUP approx reciprocal
            e = e - jnp.max(e, axis=-1, keepdims=True)
            p = jnp.exp(e)
            inv = pl.reciprocal(jnp.sum(p, axis=-1, keepdims=True), approx=True)
            att = p * inv                                              # (N, N)
            hp = jnp.dot(att, wh, preferred_element_type=jnp.float32)  # (N, D)
            oh = jnp.where(hp > 0.0, hp,
                           jnp.exp(jnp.minimum(hp, 0.0)) - 1.0)        # ELU (concat=True)
            # Scatter this head's output into the flattened activation scratch in the
            # exact torch.flatten order: column n*H*D + h*D + d.  Static lane offsets,
            # disjoint regions -> no serial dependency chain.
            for n in range(N):
                c0 = n * HD + h * D
                act_ref[b:b + 1, c0:c0 + D] = oh[n:n + 1, :]

    # self.linear as ONE (B, N*H*D) @ (N*H*D, O) matmul (replaces 16 M=1 matmuls).
    lin = jnp.dot(act_ref[...], wlin_ref[...],
                  preferred_element_type=jnp.float32) + b_lin          # (B, O)
    lin = jnp.where(lin >= 0.0, lin, OUT_ALPHA * lin)                  # self.leakyrelu
    # layer_out (O -> 1) on the VPU: multiply + lane reduce, no MXU push.
    val = jnp.sum(lin * w_out, axis=-1, keepdims=True) + b_out         # (B, 1)
    o_ref[...] = jnp.broadcast_to(val, (B, OUT_LANES))                 # single full store


def gat1_forward(x, params):
    """x: (B, num_nodes, nfeat) -> (B, 1)."""
    W_att, a_att, W_lin, b_lin, W_out, b_out = params
    B, N, F = x.shape
    H, _, D = W_att.shape
    O = W_lin.shape[1]

    # Wrapper-side layout plumbing on parameters only (one-time, free):
    x_flat = x.reshape(B * N, F)
    w_heads = jnp.transpose(W_att, (1, 0, 2)).reshape(F, H * D)        # col h*D + d
    w_src = jnp.einsum('hfd,hd->fh', W_att, a_att[:, 0, :])            # (F, H)
    w_pack = jnp.concatenate([w_heads, w_src], axis=1)                 # (F, H*D + H)
    w_dstT = jnp.einsum('hfd,hd->hf', W_att, a_att[:, 1, :])           # (H, F)
    tail = jnp.concatenate([b_lin.reshape(1, O), W_out.reshape(1, O)], axis=0)
    b_out2 = jnp.asarray(b_out, jnp.float32).reshape(1, 1)

    flops = int(
        2 * (B * N) * F * (H * D + H)                  # packed Wh / f_src matmul
        + 2 * H * F * (B * N)                          # f_dst matmul
        + B * H * (9 * N * N + 2 * N * N * D + 3 * N * D)
        + 2 * B * (N * H * D) * O + B * (4 * O + 2))
    transcendentals = int(B * H * (N * N + N * D + N))
    bytes_accessed = int(4 * (x_flat.size + w_pack.size + w_dstT.size + W_lin.size
                              + tail.size + 1 + B * OUT_LANES))

    out_padded = pl.pallas_call(
        gat1_kernel,
        out_shape=jax.ShapeDtypeStruct((B, OUT_LANES), jnp.float32),
        in_specs=[
            pl.BlockSpec(memory_space=pltpu.MemorySpace.VMEM),   # x_flat
            pl.BlockSpec(memory_space=pltpu.MemorySpace.VMEM),   # w_pack
            pl.BlockSpec(memory_space=pltpu.MemorySpace.VMEM),   # w_dstT
            pl.BlockSpec(memory_space=pltpu.MemorySpace.VMEM),   # W_lin (2-D)
            pl.BlockSpec(memory_space=pltpu.MemorySpace.VMEM),   # tail (b_lin | w_out)
            pl.BlockSpec(memory_space=pltpu.MemorySpace.SMEM),   # b_out scalar
        ],
        out_specs=pl.BlockSpec(memory_space=pltpu.MemorySpace.VMEM),
        scratch_shapes=[pltpu.VMEM((B, N * H * D), jnp.float32)],
        cost_estimate=pl.CostEstimate(flops=flops,
                                      transcendentals=transcendentals,
                                      bytes_accessed=bytes_accessed),
    )(x_flat, w_pack, w_dstT, W_lin, tail, b_out2)

    return out_padded[:, :1]


def init_params(key, num_nodes, nfeat, nhid, out_channels, nheads):
    """Deterministic init: xavier-like for attention, PyTorch-Linear-style for the MLP tail."""
    keys = jax.random.split(key, 6)
    in_lin = num_nodes * nheads * nhid

    def uni(k, shape, bound):
        return jax.random.uniform(k, shape, jnp.float32, -bound, bound)

    W_att = uni(keys[0], (nheads, nfeat, nhid), 1.414 * (6.0 / (nfeat + nhid)) ** 0.5)
    a_att = uni(keys[1], (nheads, 2, nhid), 1.414 * (6.0 / (2 * nhid + 1)) ** 0.5)
    W_lin = uni(keys[2], (in_lin, out_channels), 1.0 / in_lin ** 0.5)
    b_lin = uni(keys[3], (out_channels,), 1.0 / in_lin ** 0.5)
    W_out = uni(keys[4], (out_channels, 1), 1.0 / out_channels ** 0.5)
    b_out = uni(keys[5], (), 1.0 / out_channels ** 0.5)
    return (W_att, a_att, W_lin, b_lin, W_out, b_out)


def reference_forward(x, params):
    """Pure-jnp reference matching the PyTorch forward at inference."""
    W_att, a_att, W_lin, b_lin, W_out, b_out = params
    B, N, _ = x.shape
    H, _, D = W_att.shape

    heads = []
    for h in range(H):
        Wh = x @ W_att[h]                                  # (B, N, D)
        f_src = Wh @ a_att[h, 0]                           # (B, N)
        f_dst = Wh @ a_att[h, 1]                           # (B, N)
        e = f_src[:, :, None] + f_dst[:, None, :]          # (B, N, N)
        e = jnp.where(e >= 0.0, e, ATT_ALPHA * e)
        e = e - jnp.max(e, axis=-1, keepdims=True)
        p = jnp.exp(e)
        att = p / jnp.sum(p, axis=-1, keepdims=True)
        hp = att @ Wh                                      # (B, N, D)
        heads.append(jnp.where(hp > 0.0, hp, jnp.exp(jnp.minimum(hp, 0.0)) - 1.0))

    xc = jnp.concatenate(heads, axis=2)                    # (B, N, H*D)
    xf = xc.reshape(B, N * H * D)                          # torch.flatten(x, 1)
    lin = xf @ W_lin + b_lin
    lin = jnp.where(lin >= 0.0, lin, OUT_ALPHA * lin)      # nn.LeakyReLU()
    return lin @ W_out + b_out                             # (B, 1)


if __name__ == "__main__":
    # Small shapes consistent with the module's constructor signature.
    num_nodes, nfeat, nhid, out_channels, nheads = 4, 16, 32, 16, 2
    batch_size = 2
    # dropout = 0.3 in the module -> identity at inference, not used here.

    key = jax.random.PRNGKey(0)
    k_x, k_p = jax.random.split(key)

    x = jax.random.normal(k_x, (batch_size, num_nodes, nfeat), jnp.float32)
    params = init_params(k_p, num_nodes, nfeat, nhid, out_channels, nheads)

    out = gat1_forward(x, params)
    out = jax.block_until_ready(out)

    ref = reference_forward(x, params)
    assert out.shape == (batch_size, 1), out.shape
    # Tolerance covers the EUP approximate reciprocal used for the softmax normalization.
    assert jnp.allclose(out, ref, atol=5e-3, rtol=5e-3), (out, ref)

    print("KERNEL_OK")
</pallas_src>

<mosaic_0001>
module attributes {stable_mosaic.version = 11 : i64} {
  func.func @gat1_kernel(%arg0: memref<8x16xf32, #tpu.memory_space<vmem>>, %arg1: memref<16x66xf32, #tpu.memory_space<vmem>>, %arg2: memref<2x16xf32, #tpu.memory_space<vmem>>, %arg3: memref<256x16xf32, #tpu.memory_space<vmem>>, %arg4: memref<2x16xf32, #tpu.memory_space<vmem>>, %arg5: memref<1x1xf32, #tpu.memory_space<smem>>, %arg6: memref<2x128xf32, #tpu.memory_space<vmem>>, %arg7: memref<2x256xf32, #tpu.memory_space<vmem>>) attributes {dimension_semantics = [], scalar_prefetch = 0 : i64, scratch_operands = 1 : i64, tpu.core_type = #tpu.core_type<tc>} {
    %c0 = arith.constant 0 : index
    %c0_0 = arith.constant 0 : index
    %0 = vector.load %arg0[%c0, %c0_0] : memref<8x16xf32, #tpu.memory_space<vmem>>, vector<8x16xf32>
    %c0_1 = arith.constant 0 : index
    %c0_2 = arith.constant 0 : index
    %1 = vector.load %arg1[%c0_1, %c0_2] : memref<16x66xf32, #tpu.memory_space<vmem>>, vector<16x66xf32>
    %cst = arith.constant dense<0.000000e+00> : vector<8x66xf32>
    %2 = tpu.matmul %0, %1, %cst {dimension_numbers = #tpu.dot_dimension_numbers<[1], [0], [0], [1], [0, 0, 1, 1], [], []>} : vector<8x16xf32>, vector<16x66xf32>, vector<8x66xf32> -> vector<8x66xf32>
    %c0_3 = arith.constant 0 : index
    %c0_4 = arith.constant 0 : index
    %3 = vector.load %arg2[%c0_3, %c0_4] : memref<2x16xf32, #tpu.memory_space<vmem>>, vector<2x16xf32>
    %cst_5 = arith.constant dense<0.000000e+00> : vector<2x8xf32>
    %4 = tpu.matmul %3, %0, %cst_5 {dimension_numbers = #tpu.dot_dimension_numbers<[1], [1], [0], [0], [0, 0, 1, 0], [], []>} : vector<2x16xf32>, vector<8x16xf32>, vector<2x8xf32> -> vector<2x8xf32>
    %c0_6 = arith.constant 0 : index
    %c0_7 = arith.constant 0 : index
    %5 = vector.load %arg4[%c0_6, %c0_7] : memref<2x16xf32, #tpu.memory_space<vmem>>, vector<1x16xf32>
    %c1 = arith.constant 1 : index
    %c0_8 = arith.constant 0 : index
    %6 = vector.load %arg4[%c1, %c0_8] : memref<2x16xf32, #tpu.memory_space<vmem>>, vector<1x16xf32>
    %c0_9 = arith.constant 0 : index
    %c0_10 = arith.constant 0 : index
    %7 = memref.load %arg5[%c0_9, %c0_10] : memref<1x1xf32, #tpu.memory_space<smem>>
    %8 = vector.extract_strided_slice %2 {offsets = [0, 0], sizes = [4, 32], strides = [1, 1]} : vector<8x66xf32> to vector<4x32xf32>
    %9 = vector.extract_strided_slice %2 {offsets = [0, 64], sizes = [4, 1], strides = [1, 1]} : vector<8x66xf32> to vector<4x1xf32>
    %10 = vector.extract_strided_slice %4 {offsets = [0, 0], sizes = [1, 4], strides = [1, 1]} : vector<2x8xf32> to vector<1x4xf32>
    %11 = vector.broadcast %9 : vector<4x1xf32> to vector<4x4xf32>
    %12 = vector.broadcast %10 : vector<1x4xf32> to vector<4x4xf32>
    %13 = arith.addf %11, %12 : vector<4x4xf32>
    %cst_11 = arith.constant 0.000000e+00 : f32
    %14 = vector.broadcast %cst_11 : f32 to vector<4x4xf32>
    %15 = arith.cmpf oge, %13, %14 : vector<4x4xf32>
    %cst_12 = arith.constant 2.000000e-01 : f32
    %16 = vector.broadcast %cst_12 : f32 to vector<4x4xf32>
    %17 = arith.mulf %16, %13 : vector<4x4xf32>
    %18 = arith.select %15, %13, %17 : vector<4x4xi1>, vector<4x4xf32>
    %cst_13 = arith.constant dense<0xFF800000> : vector<4xf32>
    %19 = vector.multi_reduction <maximumf>, %18, %cst_13 [1] : vector<4x4xf32> to vector<4xf32>
    %20 = vector.shape_cast %19 : vector<4xf32> to vector<4x1xf32>
    %21 = vector.broadcast %20 : vector<4x1xf32> to vector<4x4xf32>
    %22 = arith.subf %18, %21 : vector<4x4xf32>
    %23 = math.exp %22 : vector<4x4xf32>
    %cst_14 = arith.constant dense<0.000000e+00> : vector<4xf32>
    %24 = vector.multi_reduction <add>, %23, %cst_14 [1] : vector<4x4xf32> to vector<4xf32>
    %25 = vector.shape_cast %24 : vector<4xf32> to vector<4x1xf32>
    %26 = tpu.reciprocal %25 {approx = true} : vector<4x1xf32> -> vector<4x1xf32>
    %27 = vector.broadcast %26 : vector<4x1xf32> to vector<4x4xf32>
    %28 = arith.mulf %23, %27 : vector<4x4xf32>
    %cst_15 = arith.constant dense<0.000000e+00> : vector<4x32xf32>
    %29 = tpu.matmul %28, %8, %cst_15 {dimension_numbers = #tpu.dot_dimension_numbers<[1], [0], [0], [1], [0, 0, 1, 1], [], []>} : vector<4x4xf32>, vector<4x32xf32>, vector<4x32xf32> -> vector<4x32xf32>
    %cst_16 = arith.constant 0.000000e+00 : f32
    %30 = vector.broadcast %cst_16 : f32 to vector<4x32xf32>
    %31 = arith.cmpf ogt, %29, %30 : vector<4x32xf32>
    %cst_17 = arith.constant 0.000000e+00 : f32
    %32 = vector.broadcast %cst_17 : f32 to vector<4x32xf32>
    %33 = arith.minimumf %29, %32 : vector<4x32xf32>
    %34 = math.exp %33 : vector<4x32xf32>
    %cst_18 = arith.constant 1.000000e+00 : f32
    %35 = vector.broadcast %cst_18 : f32 to vector<4x32xf32>
    %36 = arith.subf %34, %35 : vector<4x32xf32>
    %37 = arith.select %31, %29, %36 : vector<4x32xi1>, vector<4x32xf32>
    %38 = vector.extract_strided_slice %37 {offsets = [0, 0], sizes = [1, 32], strides = [1, 1]} : vector<4x32xf32> to vector<1x32xf32>
    %c0_19 = arith.constant 0 : index
    %c0_20 = arith.constant 0 : index
    %39 = vector.load %arg7[%c0_19, %c0_20] : memref<2x256xf32, #tpu.memory_space<vmem>>, vector<1x32xf32>
    tpu.vector_store %arg7[%c0_19, %c0_20], %38 {strides = array<i32>} : memref<2x256xf32, #tpu.memory_space<vmem>>, vector<1x32xf32>,
    %40 = vector.extract_strided_slice %37 {offsets = [1, 0], sizes = [1, 32], strides = [1, 1]} : vector<4x32xf32> to vector<1x32xf32>
    %c0_21 = arith.constant 0 : index
    %c64 = arith.constant 64 : index
    %41 = vector.load %arg7[%c0_21, %c64] : memref<2x256xf32, #tpu.memory_space<vmem>>, vector<1x32xf32>
    tpu.vector_store %arg7[%c0_21, %c64], %40 {strides = array<i32>} : memref<2x256xf32, #tpu.memory_space<vmem>>, vector<1x32xf32>,
    %42 = vector.extract_strided_slice %37 {offsets = [2, 0], sizes = [1, 32], strides = [1, 1]} : vector<4x32xf32> to vector<1x32xf32>
    %c0_22 = arith.constant 0 : index
    %c128 = arith.constant 128 : index
    %43 = vector.load %arg7[%c0_22, %c128] : memref<2x256xf32, #tpu.memory_space<vmem>>, vector<1x32xf32>
    tpu.vector_store %arg7[%c0_22, %c128], %42 {strides = array<i32>} : memref<2x256xf32, #tpu.memory_space<vmem>>, vector<1x32xf32>,
    %44 = vector.extract_strided_slice %37 {offsets = [3, 0], sizes = [1, 32], strides = [1, 1]} : vector<4x32xf32> to vector<1x32xf32>
    %c0_23 = arith.constant 0 : index
    %c192 = arith.constant 192 : index
    %45 = vector.load %arg7[%c0_23, %c192] : memref<2x256xf32, #tpu.memory_space<vmem>>, vector<1x32xf32>
    tpu.vector_store %arg7[%c0_23, %c192], %44 {strides = array<i32>} : memref<2x256xf32, #tpu.memory_space<vmem>>, vector<1x32xf32>,
    %46 = vector.extract_strided_slice %2 {offsets = [0, 32], sizes = [4, 32], strides = [1, 1]} : vector<8x66xf32> to vector<4x32xf32>
    %47 = vector.extract_strided_slice %2 {offsets = [0, 65], sizes = [4, 1], strides = [1, 1]} : vector<8x66xf32> to vector<4x1xf32>
    %48 = vector.extract_strided_slice %4 {offsets = [1, 0], sizes = [1, 4], strides = [1, 1]} : vector<2x8xf32> to vector<1x4xf32>
    %49 = vector.broadcast %47 : vector<4x1xf32> to vector<4x4xf32>
    %50 = vector.broadcast %48 : vector<1x4xf32> to vector<4x4xf32>
    %51 = arith.addf %49, %50 : vector<4x4xf32>
    %cst_24 = arith.constant 0.000000e+00 : f32
    %52 = vector.broadcast %cst_24 : f32 to vector<4x4xf32>
    %53 = arith.cmpf oge, %51, %52 : vector<4x4xf32>
    %cst_25 = arith.constant 2.000000e-01 : f32
    %54 = vector.broadcast %cst_25 : f32 to vector<4x4xf32>
    %55 = arith.mulf %54, %51 : vector<4x4xf32>
    %56 = arith.select %53, %51, %55 : vector<4x4xi1>, vector<4x4xf32>
    %cst_26 = arith.constant dense<0xFF800000> : vector<4xf32>
    %57 = vector.multi_reduction <maximumf>, %56, %cst_26 [1] : vector<4x4xf32> to vector<4xf32>
    %58 = vector.shape_cast %57 : vector<4xf32> to vector<4x1xf32>
    %59 = vector.broadcast %58 : vector<4x1xf32> to vector<4x4xf32>
    %60 = arith.subf %56, %59 : vector<4x4xf32>
    %61 = math.exp %60 : vector<4x4xf32>
    %cst_27 = arith.constant dense<0.000000e+00> : vector<4xf32>
    %62 = vector.multi_reduction <add>, %61, %cst_27 [1] : vector<4x4xf32> to vector<4xf32>
    %63 = vector.shape_cast %62 : vector<4xf32> to vector<4x1xf32>
    %64 = tpu.reciprocal %63 {approx = true} : vector<4x1xf32> -> vector<4x1xf32>
    %65 = vector.broadcast %64 : vector<4x1xf32> to vector<4x4xf32>
    %66 = arith.mulf %61, %65 : vector<4x4xf32>
    %cst_28 = arith.constant dense<0.000000e+00> : vector<4x32xf32>
    %67 = tpu.matmul %66, %46, %cst_28 {dimension_numbers = #tpu.dot_dimension_numbers<[1], [0], [0], [1], [0, 0, 1, 1], [], []>} : vector<4x4xf32>, vector<4x32xf32>, vector<4x32xf32> -> vector<4x32xf32>
    %cst_29 = arith.constant 0.000000e+00 : f32
    %68 = vector.broadcast %cst_29 : f32 to vector<4x32xf32>
    %69 = arith.cmpf ogt, %67, %68 : vector<4x32xf32>
    %cst_30 = arith.constant 0.000000e+00 : f32
    %70 = vector.broadcast %cst_30 : f32 to vector<4x32xf32>
    %71 = arith.minimumf %67, %70 : vector<4x32xf32>
    %72 = math.exp %71 : vector<4x32xf32>
    %cst_31 = arith.constant 1.000000e+00 : f32
    %73 = vector.broadcast %cst_31 : f32 to vector<4x32xf32>
    %74 = arith.subf %72, %73 : vector<4x32xf32>
    %75 = arith.select %69, %67, %74 : vector<4x32xi1>, vector<4x32xf32>
    %76 = vector.extract_strided_slice %75 {offsets = [0, 0], sizes = [1, 32], strides = [1, 1]} : vector<4x32xf32> to vector<1x32xf32>
    %c0_32 = arith.constant 0 : index
    %c32 = arith.constant 32 : index
    %77 = vector.load %arg7[%c0_32, %c32] : memref<2x256xf32, #tpu.memory_space<vmem>>, vector<1x32xf32>
    tpu.vector_store %arg7[%c0_32, %c32], %76 {strides = array<i32>} : memref<2x256xf32, #tpu.memory_space<vmem>>, vector<1x32xf32>,
    %78 = vector.extract_strided_slice %75 {offsets = [1, 0], sizes = [1, 32], strides = [1, 1]} : vector<4x32xf32> to vector<1x32xf32>
    %c0_33 = arith.constant 0 : index
    %c96 = arith.constant 96 : index
    %79 = vector.load %arg7[%c0_33, %c96] : memref<2x256xf32, #tpu.memory_space<vmem>>, vector<1x32xf32>
    tpu.vector_store %arg7[%c0_33, %c96], %78 {strides = array<i32>} : memref<2x256xf32, #tpu.memory_space<vmem>>, vector<1x32xf32>,
    %80 = vector.extract_strided_slice %75 {offsets = [2, 0], sizes = [1, 32], strides = [1, 1]} : vector<4x32xf32> to vector<1x32xf32>
    %c0_34 = arith.constant 0 : index
    %c160 = arith.constant 160 : index
    %81 = vector.load %arg7[%c0_34, %c160] : memref<2x256xf32, #tpu.memory_space<vmem>>, vector<1x32xf32>
    tpu.vector_store %arg7[%c0_34, %c160], %80 {strides = array<i32>} : memref<2x256xf32, #tpu.memory_space<vmem>>, vector<1x32xf32>,
    %82 = vector.extract_strided_slice %75 {offsets = [3, 0], sizes = [1, 32], strides = [1, 1]} : vector<4x32xf32> to vector<1x32xf32>
    %c0_35 = arith.constant 0 : index
    %c224 = arith.constant 224 : index
    %83 = vector.load %arg7[%c0_35, %c224] : memref<2x256xf32, #tpu.memory_space<vmem>>, vector<1x32xf32>
    tpu.vector_store %arg7[%c0_35, %c224], %82 {strides = array<i32>} : memref<2x256xf32, #tpu.memory_space<vmem>>, vector<1x32xf32>,
    %84 = vector.extract_strided_slice %2 {offsets = [4, 0], sizes = [4, 32], strides = [1, 1]} : vector<8x66xf32> to vector<4x32xf32>
    %85 = vector.extract_strided_slice %2 {offsets = [4, 64], sizes = [4, 1], strides = [1, 1]} : vector<8x66xf32> to vector<4x1xf32>
    %86 = vector.extract_strided_slice %4 {offsets = [0, 4], sizes = [1, 4], strides = [1, 1]} : vector<2x8xf32> to vector<1x4xf32>
    %87 = vector.broadcast %85 : vector<4x1xf32> to vector<4x4xf32>
    %88 = vector.broadcast %86 : vector<1x4xf32> to vector<4x4xf32>
    %89 = arith.addf %87, %88 : vector<4x4xf32>
    %cst_36 = arith.constant 0.000000e+00 : f32
    %90 = vector.broadcast %cst_36 : f32 to vector<4x4xf32>
    %91 = arith.cmpf oge, %89, %90 : vector<4x4xf32>
    %cst_37 = arith.constant 2.000000e-01 : f32
    %92 = vector.broadcast %cst_37 : f32 to vector<4x4xf32>
    %93 = arith.mulf %92, %89 : vector<4x4xf32>
    %94 = arith.select %91, %89, %93 : vector<4x4xi1>, vector<4x4xf32>
    %cst_38 = arith.constant dense<0xFF800000> : vector<4xf32>
    %95 = vector.multi_reduction <maximumf>, %94, %cst_38 [1] : vector<4x4xf32> to vector<4xf32>
    %96 = vector.shape_cast %95 : vector<4xf32> to vector<4x1xf32>
    %97 = vector.broadcast %96 : vector<4x1xf32> to vector<4x4xf32>
    %98 = arith.subf %94, %97 : vector<4x4xf32>
    %99 = math.exp %98 : vector<4x4xf32>
    %cst_39 = arith.constant dense<0.000000e+00> : vector<4xf32>
    %100 = vector.multi_reduction <add>, %99, %cst_39 [1] : vector<4x4xf32> to vector<4xf32>
    %101 = vector.shape_cast %100 : vector<4xf32> to vector<4x1xf32>
    %102 = tpu.reciprocal %101 {approx = true} : vector<4x1xf32> -> vector<4x1xf32>
    %103 = vector.broadcast %102 : vector<4x1xf32> to vector<4x4xf32>
    %104 = arith.mulf %99, %103 : vector<4x4xf32>
    %cst_40 = arith.constant dense<0.000000e+00> : vector<4x32xf32>
    %105 = tpu.matmul %104, %84, %cst_40 {dimension_numbers = #tpu.dot_dimension_numbers<[1], [0], [0], [1], [0, 0, 1, 1], [], []>} : vector<4x4xf32>, vector<4x32xf32>, vector<4x32xf32> -> vector<4x32xf32>
    %cst_41 = arith.constant 0.000000e+00 : f32
    %106 = vector.broadcast %cst_41 : f32 to vector<4x32xf32>
    %107 = arith.cmpf ogt, %105, %106 : vector<4x32xf32>
    %cst_42 = arith.constant 0.000000e+00 : f32
    %108 = vector.broadcast %cst_42 : f32 to vector<4x32xf32>
    %109 = arith.minimumf %105, %108 : vector<4x32xf32>
    %110 = math.exp %109 : vector<4x32xf32>
    %cst_43 = arith.constant 1.000000e+00 : f32
    %111 = vector.broadcast %cst_43 : f32 to vector<4x32xf32>
    %112 = arith.subf %110, %111 : vector<4x32xf32>
    %113 = arith.select %107, %105, %112 : vector<4x32xi1>, vector<4x32xf32>
    %114 = vector.extract_strided_slice %113 {offsets = [0, 0], sizes = [1, 32], strides = [1, 1]} : vector<4x32xf32> to vector<1x32xf32>
    %c1_44 = arith.constant 1 : index
    %c0_45 = arith.constant 0 : index
    %115 = vector.load %arg7[%c1_44, %c0_45] : memref<2x256xf32, #tpu.memory_space<vmem>>, vector<1x32xf32>
    tpu.vector_store %arg7[%c1_44, %c0_45], %114 {strides = array<i32>} : memref<2x256xf32, #tpu.memory_space<vmem>>, vector<1x32xf32>,
    %116 = vector.extract_strided_slice %113 {offsets = [1, 0], sizes = [1, 32], strides = [1, 1]} : vector<4x32xf32> to vector<1x32xf32>
    %c1_46 = arith.constant 1 : index
    %c64_47 = arith.constant 64 : index
    %117 = vector.load %arg7[%c1_46, %c64_47] : memref<2x256xf32, #tpu.memory_space<vmem>>, vector<1x32xf32>
    tpu.vector_store %arg7[%c1_46, %c64_47], %116 {strides = array<i32>} : memref<2x256xf32, #tpu.memory_space<vmem>>, vector<1x32xf32>,
    %118 = vector.extract_strided_slice %113 {offsets = [2, 0], sizes = [1, 32], strides = [1, 1]} : vector<4x32xf32> to vector<1x32xf32>
    %c1_48 = arith.constant 1 : index
    %c128_49 = arith.constant 128 : index
    %119 = vector.load %arg7[%c1_48, %c128_49] : memref<2x256xf32, #tpu.memory_space<vmem>>, vector<1x32xf32>
    tpu.vector_store %arg7[%c1_48, %c128_49], %118 {strides = array<i32>} : memref<2x256xf32, #tpu.memory_space<vmem>>, vector<1x32xf32>,
    %120 = vector.extract_strided_slice %113 {offsets = [3, 0], sizes = [1, 32], strides = [1, 1]} : vector<4x32xf32> to vector<1x32xf32>
    %c1_50 = arith.constant 1 : index
    %c192_51 = arith.constant 192 : index
    %121 = vector.load %arg7[%c1_50, %c192_51] : memref<2x256xf32, #tpu.memory_space<vmem>>, vector<1x32xf32>
    tpu.vector_store %arg7[%c1_50, %c192_51], %120 {strides = array<i32>} : memref<2x256xf32, #tpu.memory_space<vmem>>, vector<1x32xf32>,
    %122 = vector.extract_strided_slice %2 {offsets = [4, 32], sizes = [4, 32], strides = [1, 1]} : vector<8x66xf32> to vector<4x32xf32>
    %123 = vector.extract_strided_slice %2 {offsets = [4, 65], sizes = [4, 1], strides = [1, 1]} : vector<8x66xf32> to vector<4x1xf32>
    %124 = vector.extract_strided_slice %4 {offsets = [1, 4], sizes = [1, 4], strides = [1, 1]} : vector<2x8xf32> to vector<1x4xf32>
    %125 = vector.broadcast %123 : vector<4x1xf32> to vector<4x4xf32>
    %126 = vector.broadcast %124 : vector<1x4xf32> to vector<4x4xf32>
    %127 = arith.addf %125, %126 : vector<4x4xf32>
    %cst_52 = arith.constant 0.000000e+00 : f32
    %128 = vector.broadcast %cst_52 : f32 to vector<4x4xf32>
    %129 = arith.cmpf oge, %127, %128 : vector<4x4xf32>
    %cst_53 = arith.constant 2.000000e-01 : f32
    %130 = vector.broadcast %cst_53 : f32 to vector<4x4xf32>
    %131 = arith.mulf %130, %127 : vector<4x4xf32>
    %132 = arith.select %129, %127, %131 : vector<4x4xi1>, vector<4x4xf32>
    %cst_54 = arith.constant dense<0xFF800000> : vector<4xf32>
    %133 = vector.multi_reduction <maximumf>, %132, %cst_54 [1] : vector<4x4xf32> to vector<4xf32>
    %134 = vector.shape_cast %133 : vector<4xf32> to vector<4x1xf32>
    %135 = vector.broadcast %134 : vector<4x1xf32> to vector<4x4xf32>
    %136 = arith.subf %132, %135 : vector<4x4xf32>
    %137 = math.exp %136 : vector<4x4xf32>
    %cst_55 = arith.constant dense<0.000000e+00> : vector<4xf32>
    %138 = vector.multi_reduction <add>, %137, %cst_55 [1] : vector<4x4xf32> to vector<4xf32>
    %139 = vector.shape_cast %138 : vector<4xf32> to vector<4x1xf32>
    %140 = tpu.reciprocal %139 {approx = true} : vector<4x1xf32> -> vector<4x1xf32>
    %141 = vector.broadcast %140 : vector<4x1xf32> to vector<4x4xf32>
    %142 = arith.mulf %137, %141 : vector<4x4xf32>
    %cst_56 = arith.constant dense<0.000000e+00> : vector<4x32xf32>
    %143 = tpu.matmul %142, %122, %cst_56 {dimension_numbers = #tpu.dot_dimension_numbers<[1], [0], [0], [1], [0, 0, 1, 1], [], []>} : vector<4x4xf32>, vector<4x32xf32>, vector<4x32xf32> -> vector<4x32xf32>
    %cst_57 = arith.constant 0.000000e+00 : f32
    %144 = vector.broadcast %cst_57 : f32 to vector<4x32xf32>
    %145 = arith.cmpf ogt, %143, %144 : vector<4x32xf32>
    %cst_58 = arith.constant 0.000000e+00 : f32
    %146 = vector.broadcast %cst_58 : f32 to vector<4x32xf32>
    %147 = arith.minimumf %143, %146 : vector<4x32xf32>
    %148 = math.exp %147 : vector<4x32xf32>
    %cst_59 = arith.constant 1.000000e+00 : f32
    %149 = vector.broadcast %cst_59 : f32 to vector<4x32xf32>
    %150 = arith.subf %148, %149 : vector<4x32xf32>
    %151 = arith.select %145, %143, %150 : vector<4x32xi1>, vector<4x32xf32>
    %152 = vector.extract_strided_slice %151 {offsets = [0, 0], sizes = [1, 32], strides = [1, 1]} : vector<4x32xf32> to vector<1x32xf32>
    %c1_60 = arith.constant 1 : index
    %c32_61 = arith.constant 32 : index
    %153 = vector.load %arg7[%c1_60, %c32_61] : memref<2x256xf32, #tpu.memory_space<vmem>>, vector<1x32xf32>
    tpu.vector_store %arg7[%c1_60, %c32_61], %152 {strides = array<i32>} : memref<2x256xf32, #tpu.memory_space<vmem>>, vector<1x32xf32>,
    %154 = vector.extract_strided_slice %151 {offsets = [1, 0], sizes = [1, 32], strides = [1, 1]} : vector<4x32xf32> to vector<1x32xf32>
    %c1_62 = arith.constant 1 : index
    %c96_63 = arith.constant 96 : index
    %155 = vector.load %arg7[%c1_62, %c96_63] : memref<2x256xf32, #tpu.memory_space<vmem>>, vector<1x32xf32>
    tpu.vector_store %arg7[%c1_62, %c96_63], %154 {strides = array<i32>} : memref<2x256xf32, #tpu.memory_space<vmem>>, vector<1x32xf32>,
    %156 = vector.extract_strided_slice %151 {offsets = [2, 0], sizes = [1, 32], strides = [1, 1]} : vector<4x32xf32> to vector<1x32xf32>
    %c1_64 = arith.constant 1 : index
    %c160_65 = arith.constant 160 : index
    %157 = vector.load %arg7[%c1_64, %c160_65] : memref<2x256xf32, #tpu.memory_space<vmem>>, vector<1x32xf32>
    tpu.vector_store %arg7[%c1_64, %c160_65], %156 {strides = array<i32>} : memref<2x256xf32, #tpu.memory_space<vmem>>, vector<1x32xf32>,
    %158 = vector.extract_strided_slice %151 {offsets = [3, 0], sizes = [1, 32], strides = [1, 1]} : vector<4x32xf32> to vector<1x32xf32>
    %c1_66 = arith.constant 1 : index
    %c224_67 = arith.constant 224 : index
    %159 = vector.load %arg7[%c1_66, %c224_67] : memref<2x256xf32, #tpu.memory_space<vmem>>, vector<1x32xf32>
    tpu.vector_store %arg7[%c1_66, %c224_67], %158 {strides = array<i32>} : memref<2x256xf32, #tpu.memory_space<vmem>>, vector<1x32xf32>,
    %c0_68 = arith.constant 0 : index
    %c0_69 = arith.constant 0 : index
    %160 = vector.load %arg7[%c0_68, %c0_69] : memref<2x256xf32, #tpu.memory_space<vmem>>, vector<2x256xf32>
    %c0_70 = arith.constant 0 : index
    %c0_71 = arith.constant 0 : index
    %161 = vector.load %arg3[%c0_70, %c0_71] : memref<256x16xf32, #tpu.memory_space<vmem>>, vector<256x16xf32>
    %cst_72 = arith.constant dense<0.000000e+00> : vector<2x16xf32>
    %162 = tpu.matmul %160, %161, %cst_72 {dimension_numbers = #tpu.dot_dimension_numbers<[1], [0], [0], [1], [0, 0, 1, 1], [], []>} : vector<2x256xf32>, vector<256x16xf32>, vector<2x16xf32> -> vector<2x16xf32>
    %163 = vector.broadcast %5 : vector<1x16xf32> to vector<2x16xf32>
    %164 = arith.addf %162, %163 : vector<2x16xf32>
    %cst_73 = arith.constant 0.000000e+00 : f32
    %165 = vector.broadcast %cst_73 : f32 to vector<2x16xf32>
    %166 = arith.cmpf oge, %164, %165 : vector<2x16xf32>
    %cst_74 = arith.constant 0.00999999977 : f32
    %167 = vector.broadcast %cst_74 : f32 to vector<2x16xf32>
    %168 = arith.mulf %167, %164 : vector<2x16xf32>
    %169 = arith.select %166, %164, %168 : vector<2x16xi1>, vector<2x16xf32>
    %170 = vector.broadcast %6 : vector<1x16xf32> to vector<2x16xf32>
    %171 = arith.mulf %169, %170 : vector<2x16xf32>
    %cst_75 = arith.constant dense<0.000000e+00> : vector<2xf32>
    %172 = vector.multi_reduction <add>, %171, %cst_75 [1] : vector<2x16xf32> to vector<2xf32>
    %173 = vector.shape_cast %172 : vector<2xf32> to vector<2x1xf32>
    %174 = vector.broadcast %7 : f32 to vector<2x1xf32>
    %175 = arith.addf %173, %174 : vector<2x1xf32>
    %176 = vector.shape_cast %175 : vector<2x1xf32> to vector<2x1xf32>
    %177 = vector.broadcast %176 : vector<2x1xf32> to vector<2x128xf32>
    %c0_76 = arith.constant 0 : index
    %c0_77 = arith.constant 0 : index
    %178 = vector.load %arg6[%c0_76, %c0_77] : memref<2x128xf32, #tpu.memory_space<vmem>>, vector<2x128xf32>
    tpu.vector_store %arg6[%c0_76, %c0_77], %177 {strides = array<i32>} : memref<2x128xf32, #tpu.memory_space<vmem>>, vector<2x128xf32>,
    return
  }
}

</mosaic_0001>

<bundles_post_ra>
// kernel: tpu_custom_call.1
= control target key start
LH: loop header
LB: loop body
LE: loop exit
PB: predicated region body
PF: predicated region fallthrough
CT: control target
= control target key end

     0   :  { %v1055_v2 = vmov 0.0|0.0   ;;  %vm1056_vm0 = vmmov 0   ;;  %v1057_v4 = vmov 0.0   ;;  %s1311_s0 = inlined_call_operand.vmem [shape: f32[8,16], index: 0, kind: input, shape index: {}]   ;;  %s1312_s1 = inlined_call_operand.vmem [shape: f32[16,66], index: 1, kind: input, shape index: {}]   ;;  %s1313_s2 = inlined_call_operand.vmem [shape: f32[2,16], index: 2, kind: input, shape index: {}]   ;;  %s1314_s3 = inlined_call_operand.vmem [shape: f32[256,16], index: 3, kind: input, shape index: {}]   ;;  %s1315_s4 = inlined_call_operand.vmem [shape: f32[2,16], index: 4, kind: input, shape index: {}]   ;;  %s1316_s5 = inlined_call_operand.<no memory space> [shape: f32[1,1], index: 5, kind: input, shape index: {}]   ;;  %s1317_s6 = inlined_call_operand.hbm [shape: f32[2,128], index: 6, kind: output, shape index: {}]  }
   0x1   :  { %v26_v0 = vld [vmem:[%s1312_s1] sm:$0xff]  ;;  %v27_v1 = vld [vmem:[%s1312_s1 + $0x8] sm:$0xff]  ;;  %959 = vmatprep.subr.bf16.mxu1 %v1055_v2  ;;  %931 = vmatprep.mubr.msk.f32.mxu1 %vm1056_vm0, %v1057_v4 }
   0x2   :  { %v960_v3 = vpack.c.bf16 %v27_v1, %v26_v0 }
   0x3   :  { %12 = vsyncpa [#allocation5], 0  ;;  %v1058_v5 = vmov 64   ;;  %v25_v6 = vld [vmem:[%s1311_s0] sm:$0xff]  ;;  %vm28_vm1 = vcmask 130048   ;;  %vm208_vm2 = vcmask 1043456   ;;  %v184_v13 = vlaneseq }
   0x4   :  { %1005 = vset.pattern.permute.xlu0 %v1058_v5  ;;  %961 = vmatpush3.bf16.msra.mxu1 %v960_v3  ;;  %v102_v7 = vld [vmem:[%s1313_s2] sm:$0x3]  ;;  %v1059_v10 = vmov 65   ;;  %vm450_vm4 = vcmask 64548   ;;  %s1060_s0 = smov 124   ;;  %vm192_vm6 = vcmask 27648  }
   0x5   :  { %934 = vmatprep.subr.mxu1 %v1057_v4  ;;  %v1128_v14 = vshrl.u32 %v184_v13, 7  ;;  %s1061_s2 = smov 96   ;;  %vm461_vm7 = vcmask 31748   ;;  %vm204_vm8 = vcmask 31744   ;;  %vm287_vm9 = vcmask 253952   ;;  %s1063_s22 = smov 64  }
   0x6   :  { %vm302_vm14 = vcmask 778752   ;;  %vm430_vm15 = vcmask 516352   ;;  %s1065_s23 = smov [#allocation4]  }
   0x7   :  { %932 = vmatmul.mubr.msk.f32.vlgmr.msra.gmra.mrb[0].mxu1 %vm28_vm1, %v25_v6  ;;  %v186_v15 = vsub.s32 0, %v1128_v14  ;;  %v319_v17 = vsub.s32 1, %v1128_v14  ;;  %s845_s24 = sshll.u32 %s1065_s23, 4  ;;  %s846_s24 = int_to_ptr.vmem [resolvable:$true] %s845_s24 }
   0x8   :  { %936 = vmatprep.mubr.msk.f32.mxu1 %vm1056_vm0, %v1057_v4  ;;  %s1031_s25 = scalar_lea.vmem %s846_s24, 32  ;;  %p1036_p1 = scmp.lt.s32.totalorder %s846_s24, %s846_s24 }
   0x9   :  { %p1032_p0 = scmp.ne.s32.totalorder %s846_s24, %s1031_s25  ;;  %p1037_p2 = scmp.lt.s32.totalorder %s1031_s25, %s1031_s25 }
   0xb   :  { %p1038_p3 = por %p1037_p2, %p1036_p1 }
   0xd   :  { %935 = vmatpush3.xpose.msk.msra.mxu1 %vm28_vm1, %v25_v6  ;;  %p1039_p4 = pnand %p1038_p3, %p1032_p0 }
   0xe   :  { %939 = vmatprep.subr.mxu1 %v1057_v4 }
  0x10   :  { %937 = vmatmul.mubr.msk.f32.vlgmr.msra.gmra.mrb[2].mxu1 %vm28_vm1, %v102_v7 }
  0x11   :  { %941 = vmatprep.mubr.msk.f32.mxu1 %vm1056_vm0, %v1057_v4 }
  0xda   :  { %v1121_v8 = vpop.f32.mrb[0].mxu1 }
  0xdb   :  { %181 = vperm.xlu0 %1005, %v1121_v8   ;;  %v933_v9 = vpop.f32.mrb[1].mxu1  ;;  %940 = vmatpush3.msk.msra.mxu1 %vm208_vm2, %v1121_v8  ;;  %v471_v39 = vrot.slane %v1121_v8, 4 }
  0xdc   :  { %944 = vmatprep.subr.mxu1 %v1057_v4 }
  0xdf   :  { %1006 = vset.pattern.permute.xlu0 %v1059_v10 }
  0xe0   :  { %314 = vperm.xlu0 %1006, %v1121_v8  }
  0xe3   :  { %v172_v11 = vpop.f32.mrb[2].mxu1 }
  0xe4   :  { %v938_v12 = vpop.f32.mrb[3].mxu1  ;;  %v187_v16 = vrot.slane %v172_v11, %v186_v15  ;;  %v320_v21 = vrot.slane %v172_v11, %v319_v17  ;;  %v1062_v17 = vmov 1983009808  }
 0x15a   :  { %v182_v18 = vpop.permute.xlu0 %181 }
 0x15b   :  { %v188_v19 = vadd.f32 %v187_v16, %v182_v18  ;;  %v291_v18 = vunpack.c.l.s4 %v1062_v17  ;;  %v717_v17 = vld [vmem:[%s1314_s3 + $0x50] sm:$0xff] }
 0x15d   :  { %vm189_vm3 = vcmp.ge.f32.partialorder %v188_v19, 0.0  ;;  %v190_v20 = vmul.f32 0.2, %v188_v19 }
 0x15f   :  { %v315_v22 = vpop.permute.xlu0 %314  ;;  %v191_v23 = vsel %vm189_vm3, %v188_v19, %v190_v20  ;;  %v292_v20 = vunpack.c.0.s8 %v291_v18  ;;  %v718_v18 = vld [vmem:[%s1314_s3 + $0x58] sm:$0xff] }
 0x160   :  { %v321_v24 = vadd.f32 %v320_v21, %v315_v22  ;;  %v451_v25 = vsel %vm450_vm4, %v191_v23, -inf  ;;  %v193_v38 = vsel %vm192_vm6, %v191_v23, -inf }
 0x161   :  { %452 = vmax.xlane.f32.xlu1 %v451_v25  ;;  %v1160_v22 = vsub.s32 %v292_v20, %v1128_v14  ;;  %v707_v14 = vld [vmem:[%s1314_s3] sm:$0xff]  ;;  %v984_v20 = vpack.c.bf16 %v718_v18, %v717_v17 }
 0x162   :  { %vm322_vm5 = vcmp.ge.f32.partialorder %v321_v24, 0.0  ;;  %v323_v26 = vmul.f32 0.2, %v321_v24 }
 0x164   :  { %v324_v27 = vsel %vm322_vm5, %v321_v24, %v323_v26 }
 0x165   :  { %v576_v28 = vsel %vm450_vm4, %v324_v27, -inf  ;;  %v325_v37 = vsel %vm192_vm6, %v324_v27, -inf }
 0x166   :  { %577 = vmax.xlane.f32.xlu1 %v576_v28  ;;  %v724_v28 = vld [vmem:[%s1314_s3 + $0x88] sm:$0xff] }
 0x1ee   :  { %v453_v29 = vpop.xlane.xlu1 %452 }
 0x1ef   :  { %v454_v30 = vsub.f32 %v191_v23, %v453_v29 }
 0x1f1   :  { %v455_v31 = vmul.f32 1.442695, %v454_v30 }
 0x1f3   :  { %1007 = vpow2.f32 %v455_v31  ;;  %v578_v32 = vpop.xlane.xlu1 %577 }
 0x1f4   :  { %v579_v33 = vsub.f32 %v324_v27, %v578_v32  ;;  %v708_v32 = vld [vmem:[%s1314_s3 + $0x8] sm:$0xff] }
 0x1f6   :  { %v580_v34 = vmul.f32 1.442695, %v579_v33  ;;  %v725_v33 = vld [vmem:[%s1314_s3 + $0x90] sm:$0xff] }
 0x1f8   :  { %1009 = vpow2.f32 %v580_v34  ;;  %v726_v34 = vld [vmem:[%s1314_s3 + $0x98] sm:$0xff] }
 0x1fd   :  { %v1008_v35 = vpop.eup %1007 }
 0x1fe   :  { %458 = vrot.lane.b32.xlu1 %v1008_v35, %s1060_s0 }
 0x202   :  { %v1010_v36 = vpop.eup %1009 }
 0x203   :  { %583 = vrot.lane.b32.xlu0 %v1010_v36, %s1060_s0 }
 0x222   :  { %326 = vmax.xlane.f32.xlu1 %v325_v37  ;;  %194 = vmax.xlane.f32.xlu0 %v193_v38  ;;  %v966_v37 = vpack.c.bf16 %v726_v34, %v725_v33  ;;  %v709_v38 = vld [vmem:[%s1314_s3 + $0x10] sm:$0xff] }
 0x223   :  { %v721_v34 = vld [vmem:[%s1314_s3 + $0x70] sm:$0xff] }
 0x233   :  { %336 = vrot.lane.b32.xlu1 %v1121_v8, %s1061_s2 }
 0x237   :  { %595 = vrot.lane.b32.xlu1 %v471_v39, %s1061_s2 }
 0x270   :  { %v459_v40 = vpop.permute.xlu1 %458 }
 0x271   :  { %v462_v41 = vsel %vm461_vm7, %v459_v40, 0.0  ;;  %v727_v40 = vld [vmem:[%s1314_s3 + $0xa0] sm:$0xff] }
 0x272   :  { %463 = vadd.xlane.f32.xlu0 %v462_v41 }
 0x275   :  { %v584_v42 = vpop.permute.xlu0 %583 }
 0x276   :  { %v586_v43 = vsel %vm461_vm7, %v584_v42, 0.0 }
 0x277   :  { %587 = vadd.xlane.f32.xlu0 %v586_v43  ;;  %v728_v43 = vld [vmem:[%s1314_s3 + $0xa8] sm:$0xff] }
 0x2af   :  { %v327_v44 = vpop.xlane.xlu1 %326  ;;  %v195_v45 = vpop.xlane.xlu0 %194 }
 0x2b0   :  { %v328_v46 = vsub.f32 %v324_v27, %v327_v44  ;;  %v196_v47 = vsub.f32 %v191_v23, %v195_v45  ;;  %v723_v27 = vld [vmem:[%s1314_s3 + $0x80] sm:$0xff]  ;;  %v970_v45 = vpack.c.bf16 %v728_v43, %v727_v40 }
 0x2b1   :  { %v962_v31 = vpack.c.bf16 %v724_v28, %v723_v27  ;;  %v720_v28 = vld [vmem:[%s1314_s3 + $0x68] sm:$0xff] }
 0x2b2   :  { %v197_v48 = vmul.f32 1.442695, %v196_v47  ;;  %v329_v49 = vmul.f32 1.442695, %v328_v46  ;;  %v711_v46 = vld [vmem:[%s1314_s3 + $0x20] sm:$0xff]  ;;  %v712_v47 = vld [vmem:[%s1314_s3 + $0x28] sm:$0xff] }
 0x2b3   :  { %v337_v2 = vpop.permute.xlu1 %336  ;;  %963 = vmatprep.subr.bf16.mxu0 %v962_v31 }
 0x2b4   :  { %1011 = vpow2.f32 %v197_v48 }
 0x2b5   :  { %1013 = vpow2.f32 %v329_v49  ;;  %v972_v49 = vpack.c.bf16 %v712_v47, %v711_v46 }
 0x2b7   :  { %v596_v7 = vpop.permute.xlu1 %595 }
 0x2be   :  { %v1012_v50 = vpop.eup %1011 }
 0x2bf   :  { %v199_v51 = vsel %vm192_vm6, %v1012_v50, 0.0  ;;  %v1014_v52 = vpop.eup %1013 }
 0x2c0   :  { %200 = vadd.xlane.f32.xlu0 %v199_v51  ;;  %v331_v53 = vsel %vm192_vm6, %v1014_v52, 0.0 }
 0x2c4   :  { %332 = vadd.xlane.f32.xlu0 %v331_v53 }
 0x2ff   :  { %v464_v54 = vpop.xlane.xlu0 %463 }
 0x300   :  { %1015 = vrcp.f32 %v464_v54 }
 0x304   :  { %v588_v55 = vpop.xlane.xlu0 %587 }
 0x305   :  { %1017 = vrcp.f32 %v588_v55 }
 0x30a   :  { %v1016_v56 = vpop.eup %1015 }
 0x30b   :  { %v466_v57 = vmul.f32 %v1016_v56, %v1008_v35 }
 0x30d   :  { %v468_v58 = vrot.slane %v466_v57, 4 }
 0x30f   :  { %v1018_v59 = vpop.eup %1017  ;;  %469 = vrot.lane.b32.xlu0 %v468_v58, %s1060_s0 }
 0x310   :  { %v590_v60 = vmul.f32 %v1018_v59, %v1010_v36  ;;  %v964_v36 = vpack.c.bf16 %v708_v32, %v707_v14  ;;  %v737_v14 = vld [vmem:[%s1314_s3 + $0xf0] sm:$0xff] }
 0x312   :  { %v592_v61 = vrot.slane %v590_v60, 4  ;;  %965 = vmatpush3.bf16.msra.mxu0 %v964_v36  ;;  %v729_v60 = vld [vmem:[%s1314_s3 + $0xb0] sm:$0xff] }
 0x313   :  { %967 = vmatprep.subr.bf16.mxu0 %v966_v37 }
 0x314   :  { %593 = vrot.lane.b32.xlu1 %v592_v61, %s1060_s0  ;;  %s1064_s0 = smov 32   ;;  %v730_v61 = vld [vmem:[%s1314_s3 + $0xb8] sm:$0xff] }
 0x34d   :  { %v201_v62 = vpop.xlane.xlu0 %200 }
 0x34e   :  { %1019 = vrcp.f32 %v201_v62  ;;  %v974_v62 = vpack.c.bf16 %v730_v61, %v729_v60  ;;  %v878_v60 = vld [vmem:[%s1315_s4 + $0x1] ss:$0 sm:$0xff] }
 0x351   :  { %v333_v63 = vpop.xlane.xlu0 %332 }
 0x352   :  { %1021 = vrcp.f32 %v333_v63  ;;  %v713_v63 = vld [vmem:[%s1314_s3 + $0x30] sm:$0xff] }
 0x358   :  { %v1020_v0 = vpop.eup %1019 }
 0x359   :  { %v203_v1 = vmul.f32 %v1020_v0, %v1012_v50  ;;  %v714_v0 = vld [vmem:[%s1314_s3 + $0x38] sm:$0xff] }
 0x35b   :  { %942 = vmatmul.mubr.msk.f32.vlgmr.msra.gmra.mrb[4].mxu1 %vm204_vm8, %v203_v1  ;;  %v976_v1 = vpack.c.bf16 %v714_v0, %v713_v63  ;;  %v836_v0 = vstv %s1316_s5 }
 0x35c   :  { %v1022_v3 = vpop.eup %1021  ;;  %945 = vmatpush3.msk.msra.mxu1 %vm208_vm2, %v337_v2  ;;  %946 = vmatprep.mubr.msk.f32.mxu1 %vm1056_vm0, %v1057_v4  ;;  %v731_v2 = vld [vmem:[%s1314_s3 + $0xc0] sm:$0xff] }
 0x35d   :  { %v335_v5 = vmul.f32 %v1022_v3, %v1014_v52  ;;  %949 = vmatprep.subr.mxu1 %v1057_v4  ;;  %v732_v3 = vld [vmem:[%s1314_s3 + $0xc8] sm:$0xff] }
 0x35f   :  { %947 = vmatmul.mubr.msk.f32.vlgmr.msra.gmra.mrb[6].mxu1 %vm204_vm8, %v335_v5 }
 0x360   :  { %950 = vmatpush3.msk.msra.mxu1 %vm208_vm2, %v471_v39  ;;  %951 = vmatprep.mubr.msk.f32.mxu1 %vm1056_vm0, %v1057_v4  ;;  %v710_v39 = vld [vmem:[%s1314_s3 + $0x18] sm:$0xff] }
 0x361   :  { %954 = vmatprep.subr.mxu1 %v1057_v4  ;;  %v968_v44 = vpack.c.bf16 %v710_v39, %v709_v38 }
 0x363   :  { %969 = vmatpush3.bf16.msra.mxu0 %v968_v44 }
 0x364   :  { %971 = vmatprep.subr.bf16.mxu0 %v970_v45 }
 0x367   :  { %973 = vmatpush3.bf16.msra.mxu0 %v972_v49 }
 0x368   :  { %975 = vmatprep.subr.bf16.mxu0 %v974_v62 }
 0x36b   :  { %977 = vmatpush3.bf16.msra.mxu0 %v976_v1 }
 0x381   :  { %v470_v6 = vpop.permute.xlu0 %469 }
 0x382   :  { %952 = vmatmul.mubr.msk.f32.vlgmr.msra.gmra.mrb[8].mxu1 %vm204_vm8, %v470_v6  ;;  %v978_v6 = vpack.c.bf16 %v732_v3, %v731_v2 }
 0x383   :  { %955 = vmatpush3.msk.msra.mxu1 %vm208_vm2, %v596_v7  ;;  %956 = vmatprep.mubr.msk.f32.mxu1 %vm1056_vm0, %v1057_v4  ;;  %v715_v7 = vld [vmem:[%s1314_s3 + $0x40] sm:$0xff]  ;;  %vm437_vm0 = vcmask 1041152   ;;  %vm832_vm2 = vcmask 123904  }
 0x384   :  { %979 = vmatprep.subr.bf16.mxu0 %v978_v6 }
 0x386   :  { %v594_v8 = vpop.permute.xlu1 %593 }
 0x387   :  { %957 = vmatmul.mubr.msk.f32.vlgmr.msra.gmra.mrb[10].mxu1 %vm204_vm8, %v594_v8  ;;  %v716_v8 = vld [vmem:[%s1314_s3 + $0x48] sm:$0xff] }
 0x42e   :  { %v277_v9 = vpop.f32.mrb[4].mxu1 }
 0x42f   :  { %v282_v10 = vmin.f32 %v277_v9, 0.0  ;;  %v943_v11 = vpop.f32.mrb[5].mxu1  ;;  %vm281_vm10 = vcmp.gt.f32.partialorder %v277_v9, 0.0 }
 0x431   :  { %v283_v12 = vmul.f32 1.442695, %v282_v10  ;;  %v980_v10 = vpack.c.bf16 %v716_v8, %v715_v7 }
 0x432   :  { %v409_v13 = vpop.f32.mrb[6].mxu1 }
 0x433   :  { %1023 = vpow2.f32 %v283_v12  ;;  %v414_v15 = vmin.f32 %v409_v13, 0.0  ;;  %v948_v16 = vpop.f32.mrb[7].mxu1  ;;  %vm413_vm11 = vcmp.gt.f32.partialorder %v409_v13, 0.0  ;;  %981 = vmatpush3.bf16.msra.mxu0 %v980_v10  ;;  %v733_v12 = vld [vmem:[%s1314_s3 + $0xd0] sm:$0xff] }
 0x435   :  { %v415_v19 = vmul.f32 1.442695, %v414_v15 }
 0x437   :  { %1025 = vpow2.f32 %v415_v19 }
 0x43d   :  { %v1024_v21 = vpop.eup %1023 }
 0x43e   :  { %v858_v4 = vadd.f32 -1.0, %v1024_v21  ;;  %v735_v21 = vld [vmem:[%s1314_s3 + $0xe0] sm:$0xff] }
 0x440   :  { %v286_v23 = vsel %vm281_vm10, %v277_v9, %v858_v4  ;;  %v736_v4 = vld [vmem:[%s1314_s3 + $0xe8] sm:$0xff] }
 0x441   :  { %v1026_v24 = vpop.eup %1025  ;;  %v296_v25 = vrot.slane %v286_v23, %v1160_v22  ;;  %288 = vst.msk [vmem:[#allocation2] sm:$0x1] %vm287_vm9, %v286_v23  ;;  %v719_v23 = vld [vmem:[%s1314_s3 + $0x60] sm:$0xff]  ;;  %v986_v27 = vpack.c.bf16 %v736_v4, %v735_v21 }
 0x442   :  { %v863_v26 = vadd.f32 -1.0, %v1026_v24 }
 0x443   :  { %v859_v29 = vrot.slane %v296_v25, 9  ;;  %v304_v30 = vcombine.high %v296_v25, %v296_v25 }
 0x444   :  { %v418_v35 = vsel %vm413_vm11, %v409_v13, %v863_v26  ;;  %v734_v13 = vld [vmem:[%s1314_s3 + $0xd8] sm:$0xff] }
 0x445   :  { %299 = vrot.lane.b32.xlu0 %v859_v29, %s1063_s22  ;;  %v860_v41 = vrot.slane %v304_v30, 9  ;;  %v426_v42 = vrot.slane %v418_v35, %v1160_v22  ;;  %306 = vst.msk [vmem:[#allocation2 + $0x2] sm:$0x1] %vm287_vm9, %v304_v30  ;;  %v982_v16 = vpack.c.bf16 %v734_v13, %v733_v12  ;;  %v738_v29 = vld [vmem:[%s1314_s3 + $0xf8] sm:$0xff]  ;;  %v988_v30 = vpack.c.bf16 %v720_v28, %v719_v23 }
 0x446   :  { %v990_v33 = vpack.c.bf16 %v738_v29, %v737_v14  ;;  %v722_v35 = vld [vmem:[%s1314_s3 + $0x78] sm:$0xff] }
 0x447   :  { %309 = vrot.lane.b32.xlu1 %v860_v41, %s1063_s22  ;;  %v439_v48 = vcombine.high %v426_v42, %v426_v42  ;;  %v864_v50 = vrot.slane %v426_v42, 9  ;;  %983 = vmatprep.subr.bf16.mxu0 %v982_v16  ;;  %v992_v38 = vpack.c.bf16 %v722_v35, %v721_v34 }
 0x448   :  { %985 = vmatpush3.bf16.msra.mxu0 %v984_v20 }
 0x449   :  { %427 = vrot.lane.b32.xlu0 %v426_v42, %s1064_s0  ;;  %v865_v51 = vrot.slane %v439_v48, 9  ;;  %987 = vmatprep.subr.bf16.mxu0 %v986_v27 }
 0x44b   :  { %440 = vrot.lane.b32.xlu1 %v439_v48, %s1064_s0 }
 0x44c   :  { %989 = vmatpush3.bf16.msra.mxu0 %v988_v30 }
 0x44d   :  { %434 = vrot.lane.b32.xlu0 %v864_v50, %s1061_s2  ;;  %991 = vmatprep.subr.bf16.mxu0 %v990_v33 }
 0x44f   :  { %446 = vrot.lane.b32.xlu1 %v865_v51, %s1061_s2 }
 0x450   :  { %993 = vmatpush3.bf16.msra.mxu0 %v992_v38 }
 0x455   :  { %v542_v52 = vpop.f32.mrb[8].mxu1 }
 0x456   :  { %v547_v53 = vmin.f32 %v542_v52, 0.0  ;;  %v953_v54 = vpop.f32.mrb[9].mxu1  ;;  %vm546_vm12 = vcmp.gt.f32.partialorder %v542_v52, 0.0 }
 0x458   :  { %v548_v55 = vmul.f32 1.442695, %v547_v53 }
 0x45a   :  { %1027 = vpow2.f32 %v548_v55  ;;  %v667_v56 = vpop.f32.mrb[10].mxu1  ;;  %v876_v55 = vld [vmem:[%s1315_s4] ss:$0 sm:$0xff] }
 0x45b   :  { %v672_v57 = vmin.f32 %v667_v56, 0.0  ;;  %v958_v58 = vpop.f32.mrb[11].mxu1  ;;  %vm671_vm13 = vcmp.gt.f32.partialorder %v667_v56, 0.0 }
 0x45d   :  { %v673_v59 = vmul.f32 1.442695, %v672_v57 }
 0x45f   :  { %1029 = vpow2.f32 %v673_v59 }
 0x464   :  { %v1028_v5 = vpop.eup %1027 }
 0x465   :  { %v868_v9 = vadd.f32 -1.0, %v1028_v5 }
 0x467   :  { %v551_v11 = vsel %vm546_vm12, %v542_v52, %v868_v9 }
 0x468   :  { %v560_v15 = vrot.slane %v551_v11, %v1160_v22  ;;  %552 = vst.msk [vmem:[#allocation2 + $0x1] sm:$0x1] %vm287_vm9, %v551_v11 }
 0x469   :  { %v1030_v19 = vpop.eup %1029 }
 0x46a   :  { %v873_v24 = vadd.f32 -1.0, %v1030_v19  ;;  %v869_v25 = vrot.slane %v560_v15, 9  ;;  %v567_v26 = vcombine.high %v560_v15, %v560_v15 }
 0x46c   :  { %v676_v31 = vsel %vm671_vm13, %v667_v56, %v873_v24  ;;  %563 = vrot.lane.b32.xlu0 %v869_v25, %s1063_s22  ;;  %v870_v32 = vrot.slane %v567_v26, 9  ;;  %569 = vst.msk [vmem:[#allocation2 + $0x3] sm:$0x1] %vm287_vm9, %v567_v26 }
 0x46d   :  { %v684_v36 = vrot.slane %v676_v31, %v1160_v22 }
 0x46e   :  { %572 = vrot.lane.b32.xlu1 %v870_v32, %s1063_s22 }
 0x46f   :  { %v695_v37 = vcombine.high %v684_v36, %v684_v36  ;;  %v874_v39 = vrot.slane %v684_v36, 9 }
 0x470   :  { %685 = vrot.lane.b32.xlu0 %v684_v36, %s1064_s0 }
 0x471   :  { %v875_v40 = vrot.slane %v695_v37, 9 }
 0x472   :  { %696 = vrot.lane.b32.xlu1 %v695_v37, %s1064_s0 }
 0x474   :  { %691 = vrot.lane.b32.xlu0 %v874_v39, %s1061_s2 }
 0x476   :  { %702 = vrot.lane.b32.xlu1 %v875_v40, %s1061_s2 }
 0x4b7   :  { %v300_v41 = vpop.permute.xlu0 %299 }
 0x4b8   :  { %303 = vst.msk [vmem:[#allocation2] sm:$0x1] %vm302_vm14, %v300_v41 }
 0x4b9   :  { %v310_v22 = vpop.permute.xlu1 %309 }
 0x4ba   :  { %312 = vst.msk [vmem:[#allocation2 + $0x2] sm:$0x1] %vm302_vm14, %v310_v22 }
 0x4bb   :  { %v428_v42 = vpop.permute.xlu0 %427 }
 0x4bc   :  { %431 = vst.msk [vmem:[#allocation2] sm:$0x1] %vm430_vm15, %v428_v42 }
 0x4bd   :  { %v441_v43 = vpop.permute.xlu1 %440 }
 0x4be   :  { %443 = vst.msk [vmem:[#allocation2 + $0x2] sm:$0x1] %vm430_vm15, %v441_v43 }
 0x4bf   :  { %v435_v44 = vpop.permute.xlu0 %434 }
 0x4c0   :  { %438 = vst.msk [vmem:[#allocation2] sm:$0x1] %vm437_vm0, %v435_v44 }
 0x4c1   :  { %v447_v45 = vpop.permute.xlu1 %446 }
 0x4c2   :  { %449 = vst.msk [vmem:[#allocation2 + $0x2] sm:$0x1] %vm437_vm0, %v447_v45 }
 0x4de   :  { %v564_v46 = vpop.permute.xlu0 %563 }
 0x4df   :  { %566 = vst.msk [vmem:[#allocation2 + $0x1] sm:$0x1] %vm302_vm14, %v564_v46 }
 0x4e0   :  { %v573_v47 = vpop.permute.xlu1 %572 }
 0x4e1   :  { %575 = vst.msk [vmem:[#allocation2 + $0x3] sm:$0x1] %vm302_vm14, %v573_v47 }
 0x4e2   :  { %v686_v48 = vpop.permute.xlu0 %685 }
 0x4e3   :  { %688 = vst.msk [vmem:[#allocation2 + $0x1] sm:$0x1] %vm430_vm15, %v686_v48 }
 0x4e4   :  { %v697_v49 = vpop.permute.xlu1 %696 }
 0x4e5   :  { %699 = vst.msk [vmem:[#allocation2 + $0x3] sm:$0x1] %vm430_vm15, %v697_v49 }
 0x4e6   :  { %v692_v50 = vpop.permute.xlu0 %691 }
 0x4e7   :  { %694 = vst.msk [vmem:[#allocation2 + $0x1] sm:$0x1] %vm437_vm0, %v692_v50 }
 0x4e8   :  { %v703_v51 = vpop.permute.xlu1 %702 }
 0x4e9   :  { %705 = vst.msk [vmem:[#allocation2 + $0x3] sm:$0x1] %vm437_vm0, %v703_v51 }
 0x4f0   :  { %v877_v52 = vld.sshfl [vmem:[#allocation2] sm:$0x33 pattern:$0x76325410] }
 0x4f1   :  { %v751_v53 = vcombine.high %v877_v52, %v877_v52 }
 0x4f3   :  { %818 = vmatprep.mubr.f32.mxu0 %v751_v53 }
 0x4f4   :  { %819 = vmatmul.mubr.f32.vlgmr.msra.gmra.mrb[0].mxu0 %v877_v52 }
 0x5c7   :  { %v924_v54 = vpop.f32.mrb[0].mxu0 }
 0x5c8   :  { %v925_v56 = vpop.f32.mrb[1].mxu0 }
 0x5c9   :  { %v926_v57 = vadd.f32 %v925_v56, %v924_v54 }
 0x5cb   :  { %v821_v58 = vadd.f32 %v926_v57, %v876_v55 }
 0x5cd   :  { %v825_v59 = vmul.f32 0.01, %v821_v58  ;;  %vm824_vm1 = vcmp.ge.f32.partialorder %v821_v58, 0.0 }
 0x5cf   :  { %v826_v61 = vsel %vm824_vm1, %v821_v58, %v825_v59 }
 0x5d0   :  { %v831_v62 = vmul.f32 %v878_v60, %v826_v61 }
 0x5d2   :  { %v833_v63 = vsel %vm832_vm2, %v831_v62, 0.0 }
 0x5d3   :  { %834 = vadd.xlane.f32.xlu0 %v833_v63 }
 0x660   :  { %v835_v1 = vpop.xlane.xlu0 %834 }
 0x661   :  { %v837_v2 = vadd.f32 %v836_v0, %v835_v1 }
 0x663   :  { %838 = vst [vmem:[#allocation4] sm:$0x3] %v837_v2 }
 0x664   :  { %1042 = shalt.err (!%p1039_p4)
}
 0x665   :  { %s1043_s1 = scalar_lea.hbm %s1317_s6, 32 }
 0x666   :  { %p1044_p5 = scmp.ne.s32.totalorder %s1317_s6, %s1043_s1  ;;  %p1047_p6 = scmp.lt.u32.totalorder %s1043_s1, %s1317_s6 }
 0x668   :  { %p1049_p7 = pnand %p1047_p6, %p1044_p5 }
 0x66a   :  { %1052 = shalt.err (!%p1049_p7)
}
 0x66b   :  { %848 = dma.vmem_to_hbm [thread:$0]  %s846_s24, 32, %s1317_s6, [#allocation5]  }
 0x66c   :  { %1053 = dma.done.wait [#allocation5], 32  }
 0x66d   :  { %1054 = vsyncadd [#allocation5], 4294967264 }
 0x66e   :  { %852 = vsyncpa [#allocation5], 1 }

</bundles_post_ra>
